<compile_context>
chip_gen: v7x
topology: tpu7x:2x2x1
jax: 0.10.0
libtpu: 0.0.40
codegen_flags: <defaults>
</compile_context>

<pallas_src>
import functools

import jax
import jax.numpy as jnp
from jax.experimental import pallas as pl
from jax.experimental.pallas import tpu as pltpu

_LANE = 128      # lane width (last dim)
_SUBLANE = 8     # sublane width (second-to-last dim)


def _round_up(n, m):
    return ((n + m - 1) // m) * m


def _choose_batch_tiling(batch, max_batch_tile):
    """Batch tile (multiple of 8) + padded batch. Guarantees >=2 tiles when the
    batch allows it (v7x megacore + DMA/compute pipelining) and minimizes
    batch padding when the batch exceeds the tile cap."""
    b8 = _round_up(batch, _SUBLANE)
    cap = max(_SUBLANE, _round_up(max_batch_tile, _SUBLANE))
    n_tiles = pl.cdiv(b8, cap)
    if n_tiles == 1 and b8 >= 2 * _SUBLANE:
        n_tiles = 2
    tb = _round_up(pl.cdiv(b8, n_tiles), _SUBLANE)
    return tb, tb * n_tiles


def _actor_kernel(x_ref, w1_ref, b1_ref, w2_ref, b2_ref, w3_ref, b3_ref,
                  o_ref, *, action_max):
    # One batch tile per grid step. Matmuls hit the MXU (f32 accumulation via
    # preferred_element_type); clamp / bias-add / relu stay on the VPU in f32;
    # tanh goes to the EUP.
    x = jnp.clip(x_ref[...], -1.1, 1.1)

    def dense(a, w_ref, b_ref):
        w = w_ref[...]
        if w.dtype != a.dtype:
            # bf16-stored weights (pre-cast once in prepare_params): cast the
            # activation operand only; accumulation and bias math remain f32.
            a = a.astype(w.dtype)
        return jnp.dot(a, w, preferred_element_type=jnp.float32) + b_ref[...]

    h1 = jnp.maximum(dense(x, w1_ref, b1_ref), 0.0)
    h2 = jnp.maximum(dense(h1, w2_ref, b2_ref), 0.0)
    o_ref[...] = jnp.tanh(dense(h2, w3_ref, b3_ref)) * action_max


def prepare_params(params, *, weight_dtype=jnp.float32):
    """One-time parameter prep (do this OUTSIDE the hot path / training step).

    Pads the hidden dimension to a multiple of 128 lanes (zero padding is
    numerically inert: padded hidden units get zero weights and zero bias, so
    relu(0)=0 and they contribute nothing downstream). Optionally pre-casts
    the weights to bf16 (e.g. weight_dtype=jnp.bfloat16) for v6e/v7x HBM/VMEM
    savings; biases always stay f32."""
    w1, b1 = params["w1"], params["b1"]
    w2, b2 = params["w2"], params["b2"]
    w3, b3 = params["w3"], params["b3"]
    b1, b2, b3 = (jnp.reshape(b, (1, -1)) for b in (b1, b2, b3))

    s, h = w1.shape
    a = w3.shape[1]
    hp = _round_up(h, _LANE)

    def pad2(arr, rows, cols):
        return jnp.pad(arr, ((0, rows - arr.shape[0]), (0, cols - arr.shape[1])))

    return {
        "w1": pad2(w1, s, hp).astype(weight_dtype),
        "b1": pad2(b1, 1, hp).astype(jnp.float32),
        "w2": pad2(w2, hp, hp).astype(weight_dtype),
        "b2": pad2(b2, 1, hp).astype(jnp.float32),
        "w3": pad2(w3, hp, a).astype(weight_dtype),
        "b3": b3.astype(jnp.float32),
    }


def actor_forward(x, prepared, action_max, *, max_batch_tile=2048):
    """x: (B, state_size) f32. `prepared`: output of prepare_params()."""
    w1p, b1p = prepared["w1"], prepared["b1"]
    w2p, b2p = prepared["w2"], prepared["b2"]
    w3p, b3p = prepared["w3"], prepared["b3"]

    batch, s = x.shape
    hp = w1p.shape[1]
    a = w3p.shape[1]
    assert w1p.shape[0] == s, "prepared params do not match state size"

    tb, b_pad = _choose_batch_tiling(batch, max_batch_tile)
    xp = x if b_pad == batch else jnp.pad(x, ((0, b_pad - batch), (0, 0)))

    kernel = functools.partial(_actor_kernel, action_max=float(action_max))

    param_bytes = sum(int(p.size) * p.dtype.itemsize
                      for p in (w1p, b1p, w2p, b2p, w3p, b3p))
    cost = pl.CostEstimate(
        flops=2 * b_pad * (s * hp + hp * hp + hp * a),
        transcendentals=b_pad * a,                       # tanh
        bytes_accessed=int(xp.size) * xp.dtype.itemsize + b_pad * a * 4 + param_bytes,
    )

    def call(weight_mode):
        # Weights/biases: constant block index -> fetched once, VMEM-resident.
        const = lambda arr: pl.BlockSpec(arr.shape, lambda i: (0, 0),
                                         pipeline_mode=weight_mode)
        return pl.pallas_call(
            kernel,
            out_shape=jax.ShapeDtypeStruct((b_pad, a), jnp.float32),
            grid=(b_pad // tb,),
            in_specs=[
                pl.BlockSpec((tb, s), lambda i: (i, 0)),   # x: tiled over batch only
                const(w1p), const(b1p),
                const(w2p), const(b2p),
                const(w3p), const(b3p),
            ],
            out_specs=pl.BlockSpec((tb, a), lambda i: (i, 0)),
            compiler_params=pltpu.CompilerParams(
                dimension_semantics=("parallel",),          # megacore split on v7x
                vmem_limit_bytes=32 * 1024 * 1024),
            cost_estimate=cost,
        )(xp, w1p, b1p, w2p, b2p, w3p, b3p)

    try:
        # Constant-index blocks do not need a second pipeline buffer.
        out_padded = call(pl.Buffered(1))
    except Exception:
        # Fallback for Pallas versions without single-buffer pipeline_mode.
        out_padded = call(None)

    return out_padded if b_pad == batch else out_padded[:batch]


def init_params(key, state_size, hidden_size, action_size):
    """Mimics nn.Linear's U(-1/sqrt(fan_in), 1/sqrt(fan_in)) init.
    Weights stored as (in, out) -- transpose of PyTorch's (out, in)."""
    ks = jax.random.split(key, 6)

    def linear(kw, kb, fan_in, fan_out):
        bound = 1.0 / jnp.sqrt(fan_in)
        w = jax.random.uniform(kw, (fan_in, fan_out), jnp.float32, -bound, bound)
        b = jax.random.uniform(kb, (1, fan_out), jnp.float32, -bound, bound)
        return w, b

    w1, b1 = linear(ks[0], ks[1], state_size, hidden_size)
    w2, b2 = linear(ks[2], ks[3], hidden_size, hidden_size)
    w3, b3 = linear(ks[4], ks[5], hidden_size, action_size)
    return {"w1": w1, "b1": b1, "w2": w2, "b2": b2, "w3": w3, "b3": b3}


def actor_forward_ref(x, params, action_max):
    """Pure-JAX reference for correctness checking."""
    x = jnp.clip(x, -1.1, 1.1)
    h1 = jnp.maximum(x @ params["w1"] + params["b1"], 0.0)
    h2 = jnp.maximum(h1 @ params["w2"] + params["b2"], 0.0)
    return jnp.tanh(h2 @ params["w3"] + params["b3"]) * action_max


if __name__ == "__main__":
    state_size, action_size, hidden_size = 16, 8, 32
    action_max = 2.0
    batch = 32    # -> 2 batch tiles of 16: exercises the grid / pipelining path

    key = jax.random.PRNGKey(0)
    k_params, k_x = jax.random.split(key)
    params = init_params(k_params, state_size, hidden_size, action_size)
    # Some values outside [-1.1, 1.1] so the clamp path is exercised.
    x = 2.0 * jax.random.normal(k_x, (batch, state_size), jnp.float32)

    prepared = prepare_params(params)          # one-time prep, outside the hot path
    out = actor_forward(x, prepared, action_max)
    out = jax.block_until_ready(out)

    ref = actor_forward_ref(x, params, action_max)
    assert out.shape == (batch, action_size)
    # Tolerance covers a possible f32-vs-bf16-pass matmul-algorithm difference
    # between the Mosaic dot and the XLA reference dot at default precision
    # (both accumulate in f32; for bit-exact f32 pass precision=HIGHEST in both).
    assert jnp.allclose(out, ref, atol=5e-3, rtol=5e-3), "mismatch vs reference"

    print("KERNEL_OK")
</pallas_src>

<mosaic_0001>
module attributes {stable_mosaic.version = 11 : i64} {
  func.func @_actor_kernel(%arg0: i32, %arg1: memref<16x16xf32, #tpu.memory_space<vmem>>, %arg2: memref<16x128xf32, #tpu.memory_space<vmem>>, %arg3: memref<1x128xf32, #tpu.memory_space<vmem>>, %arg4: memref<128x128xf32, #tpu.memory_space<vmem>>, %arg5: memref<1x128xf32, #tpu.memory_space<vmem>>, %arg6: memref<128x8xf32, #tpu.memory_space<vmem>>, %arg7: memref<1x8xf32, #tpu.memory_space<vmem>>, %arg8: memref<16x8xf32, #tpu.memory_space<vmem>>) attributes {dimension_semantics = [#tpu.dimension_semantics<parallel>], iteration_bounds = array<i64: 2>, scalar_prefetch = 0 : i64, scratch_operands = 0 : i64, tpu.core_type = #tpu.core_type<tc>, window_params = [{transform_indices = @transform_0, window_bounds = array<i64: 16, 16>}, {pipeline_mode = #tpu.pipeline_mode<synchronous>, transform_indices = @transform_1, window_bounds = array<i64: 16, 128>}, {pipeline_mode = #tpu.pipeline_mode<synchronous>, transform_indices = @transform_2, window_bounds = array<i64: 1, 128>}, {pipeline_mode = #tpu.pipeline_mode<synchronous>, transform_indices = @transform_3, window_bounds = array<i64: 128, 128>}, {pipeline_mode = #tpu.pipeline_mode<synchronous>, transform_indices = @transform_4, window_bounds = array<i64: 1, 128>}, {pipeline_mode = #tpu.pipeline_mode<synchronous>, transform_indices = @transform_5, window_bounds = array<i64: 128, 8>}, {pipeline_mode = #tpu.pipeline_mode<synchronous>, transform_indices = @transform_6, window_bounds = array<i64: 1, 8>}, {transform_indices = @transform_7, window_bounds = array<i64: 16, 8>}]} {
    %c0 = arith.constant 0 : index
    %c0_0 = arith.constant 0 : index
    %0 = vector.load %arg1[%c0, %c0_0] : memref<16x16xf32, #tpu.memory_space<vmem>>, vector<16x16xf32>
    %cst = arith.constant -1.100000e+00 : f32
    %cst_1 = arith.constant 1.100000e+00 : f32
    %1 = vector.broadcast %cst : f32 to vector<16x16xf32>
    %2 = arith.maximumf %1, %0 : vector<16x16xf32>
    %3 = vector.broadcast %cst_1 : f32 to vector<16x16xf32>
    %4 = arith.minimumf %3, %2 : vector<16x16xf32>
    %c0_2 = arith.constant 0 : index
    %c0_3 = arith.constant 0 : index
    %5 = vector.load %arg2[%c0_2, %c0_3] : memref<16x128xf32, #tpu.memory_space<vmem>>, vector<16x128xf32>
    %cst_4 = arith.constant dense<0.000000e+00> : vector<16x128xf32>
    %6 = tpu.matmul %4, %5, %cst_4 {dimension_numbers = #tpu.dot_dimension_numbers<[1], [0], [0], [1], [0, 0, 1, 1], [], []>} : vector<16x16xf32>, vector<16x128xf32>, vector<16x128xf32> -> vector<16x128xf32>
    %c0_5 = arith.constant 0 : index
    %c0_6 = arith.constant 0 : index
    %7 = vector.load %arg3[%c0_5, %c0_6] : memref<1x128xf32, #tpu.memory_space<vmem>>, vector<1x128xf32>
    %8 = vector.broadcast %7 : vector<1x128xf32> to vector<16x128xf32>
    %9 = arith.addf %6, %8 : vector<16x128xf32>
    %cst_7 = arith.constant 0.000000e+00 : f32
    %10 = vector.broadcast %cst_7 : f32 to vector<16x128xf32>
    %11 = arith.maximumf %9, %10 : vector<16x128xf32>
    %c0_8 = arith.constant 0 : index
    %c0_9 = arith.constant 0 : index
    %12 = vector.load %arg4[%c0_8, %c0_9] : memref<128x128xf32, #tpu.memory_space<vmem>>, vector<128x128xf32>
    %cst_10 = arith.constant dense<0.000000e+00> : vector<16x128xf32>
    %13 = tpu.matmul %11, %12, %cst_10 {dimension_numbers = #tpu.dot_dimension_numbers<[1], [0], [0], [1], [0, 0, 1, 1], [], []>} : vector<16x128xf32>, vector<128x128xf32>, vector<16x128xf32> -> vector<16x128xf32>
    %c0_11 = arith.constant 0 : index
    %c0_12 = arith.constant 0 : index
    %14 = vector.load %arg5[%c0_11, %c0_12] : memref<1x128xf32, #tpu.memory_space<vmem>>, vector<1x128xf32>
    %15 = vector.broadcast %14 : vector<1x128xf32> to vector<16x128xf32>
    %16 = arith.addf %13, %15 : vector<16x128xf32>
    %cst_13 = arith.constant 0.000000e+00 : f32
    %17 = vector.broadcast %cst_13 : f32 to vector<16x128xf32>
    %18 = arith.maximumf %16, %17 : vector<16x128xf32>
    %c0_14 = arith.constant 0 : index
    %c0_15 = arith.constant 0 : index
    %19 = vector.load %arg6[%c0_14, %c0_15] : memref<128x8xf32, #tpu.memory_space<vmem>>, vector<128x8xf32>
    %cst_16 = arith.constant dense<0.000000e+00> : vector<16x8xf32>
    %20 = tpu.matmul %18, %19, %cst_16 {dimension_numbers = #tpu.dot_dimension_numbers<[1], [0], [0], [1], [0, 0, 1, 1], [], []>} : vector<16x128xf32>, vector<128x8xf32>, vector<16x8xf32> -> vector<16x8xf32>
    %c0_17 = arith.constant 0 : index
    %c0_18 = arith.constant 0 : index
    %21 = vector.load %arg7[%c0_17, %c0_18] : memref<1x8xf32, #tpu.memory_space<vmem>>, vector<1x8xf32>
    %22 = vector.broadcast %21 : vector<1x8xf32> to vector<16x8xf32>
    %23 = arith.addf %20, %22 : vector<16x8xf32>
    %24 = math.tanh %23 : vector<16x8xf32>
    %cst_19 = arith.constant 2.000000e+00 : f32
    %25 = vector.broadcast %cst_19 : f32 to vector<16x8xf32>
    %26 = arith.mulf %24, %25 : vector<16x8xf32>
    %c0_20 = arith.constant 0 : index
    %c0_21 = arith.constant 0 : index
    %27 = vector.load %arg8[%c0_20, %c0_21] : memref<16x8xf32, #tpu.memory_space<vmem>>, vector<16x8xf32>
    tpu.vector_store %arg8[%c0_20, %c0_21], %26 {strides = array<i32>} : memref<16x8xf32, #tpu.memory_space<vmem>>, vector<16x8xf32>,
    return
  }
  func.func @transform_0(%arg0: i32) -> (i32, i32) {
    %c0_i32 = arith.constant 0 : i32
    %c0_i32_0 = arith.constant 0 : i32
    return %arg0, %c0_i32 : i32, i32
  }
  func.func @transform_1(%arg0: i32) -> (i32, i32) {
    %c0_i32 = arith.constant 0 : i32
    %c0_i32_0 = arith.constant 0 : i32
    %c0_i32_1 = arith.constant 0 : i32
    return %c0_i32, %c0_i32_0 : i32, i32
  }
  func.func @transform_2(%arg0: i32) -> (i32, i32) {
    %c0_i32 = arith.constant 0 : i32
    %c0_i32_0 = arith.constant 0 : i32
    %c0_i32_1 = arith.constant 0 : i32
    return %c0_i32, %c0_i32_0 : i32, i32
  }
  func.func @transform_3(%arg0: i32) -> (i32, i32) {
    %c0_i32 = arith.constant 0 : i32
    %c0_i32_0 = arith.constant 0 : i32
    %c0_i32_1 = arith.constant 0 : i32
    return %c0_i32, %c0_i32_0 : i32, i32
  }
  func.func @transform_4(%arg0: i32) -> (i32, i32) {
    %c0_i32 = arith.constant 0 : i32
    %c0_i32_0 = arith.constant 0 : i32
    %c0_i32_1 = arith.constant 0 : i32
    return %c0_i32, %c0_i32_0 : i32, i32
  }
  func.func @transform_5(%arg0: i32) -> (i32, i32) {
    %c0_i32 = arith.constant 0 : i32
    %c0_i32_0 = arith.constant 0 : i32
    %c0_i32_1 = arith.constant 0 : i32
    return %c0_i32, %c0_i32_0 : i32, i32
  }
  func.func @transform_6(%arg0: i32) -> (i32, i32) {
    %c0_i32 = arith.constant 0 : i32
    %c0_i32_0 = arith.constant 0 : i32
    %c0_i32_1 = arith.constant 0 : i32
    return %c0_i32, %c0_i32_0 : i32, i32
  }
  func.func @transform_7(%arg0: i32) -> (i32, i32) {
    %c0_i32 = arith.constant 0 : i32
    %c0_i32_0 = arith.constant 0 : i32
    return %arg0, %c0_i32 : i32, i32
  }
}

module attributes {stable_mosaic.version = 11 : i64} {
  func.func @_actor_kernel(%arg0: i32, %arg1: memref<16x16xf32, #tpu.memory_space<vmem>>, %arg2: memref<16x128xf32, #tpu.memory_space<vmem>>, %arg3: memref<1x128xf32, #tpu.memory_space<vmem>>, %arg4: memref<128x128xf32, #tpu.memory_space<vmem>>, %arg5: memref<1x128xf32, #tpu.memory_space<vmem>>, %arg6: memref<128x8xf32, #tpu.memory_space<vmem>>, %arg7: memref<1x8xf32, #tpu.memory_space<vmem>>, %arg8: memref<16x8xf32, #tpu.memory_space<vmem>>) attributes {dimension_semantics = [#tpu.dimension_semantics<parallel>], iteration_bounds = array<i64: 2>, scalar_prefetch = 0 : i64, scratch_operands = 0 : i64, tpu.core_type = #tpu.core_type<tc>, window_params = [{transform_indices = @transform_0, window_bounds = array<i64: 16, 16>}, {pipeline_mode = #tpu.pipeline_mode<synchronous>, transform_indices = @transform_1, window_bounds = array<i64: 16, 128>}, {pipeline_mode = #tpu.pipeline_mode<synchronous>, transform_indices = @transform_2, window_bounds = array<i64: 1, 128>}, {pipeline_mode = #tpu.pipeline_mode<synchronous>, transform_indices = @transform_3, window_bounds = array<i64: 128, 128>}, {pipeline_mode = #tpu.pipeline_mode<synchronous>, transform_indices = @transform_4, window_bounds = array<i64: 1, 128>}, {pipeline_mode = #tpu.pipeline_mode<synchronous>, transform_indices = @transform_5, window_bounds = array<i64: 128, 8>}, {pipeline_mode = #tpu.pipeline_mode<synchronous>, transform_indices = @transform_6, window_bounds = array<i64: 1, 8>}, {transform_indices = @transform_7, window_bounds = array<i64: 16, 8>}]} {
    %c0 = arith.constant 0 : index
    %c0_0 = arith.constant 0 : index
    %0 = vector.load %arg1[%c0, %c0_0] : memref<16x16xf32, #tpu.memory_space<vmem>>, vector<16x16xf32>
    %cst = arith.constant -1.100000e+00 : f32
    %cst_1 = arith.constant 1.100000e+00 : f32
    %1 = vector.broadcast %cst : f32 to vector<16x16xf32>
    %2 = arith.maximumf %1, %0 : vector<16x16xf32>
    %3 = vector.broadcast %cst_1 : f32 to vector<16x16xf32>
    %4 = arith.minimumf %3, %2 : vector<16x16xf32>
    %c0_2 = arith.constant 0 : index
    %c0_3 = arith.constant 0 : index
    %5 = vector.load %arg2[%c0_2, %c0_3] : memref<16x128xf32, #tpu.memory_space<vmem>>, vector<16x128xf32>
    %cst_4 = arith.constant dense<0.000000e+00> : vector<16x128xf32>
    %6 = tpu.matmul %4, %5, %cst_4 {dimension_numbers = #tpu.dot_dimension_numbers<[1], [0], [0], [1], [0, 0, 1, 1], [], []>} : vector<16x16xf32>, vector<16x128xf32>, vector<16x128xf32> -> vector<16x128xf32>
    %c0_5 = arith.constant 0 : index
    %c0_6 = arith.constant 0 : index
    %7 = vector.load %arg3[%c0_5, %c0_6] : memref<1x128xf32, #tpu.memory_space<vmem>>, vector<1x128xf32>
    %8 = vector.broadcast %7 : vector<1x128xf32> to vector<16x128xf32>
    %9 = arith.addf %6, %8 : vector<16x128xf32>
    %cst_7 = arith.constant 0.000000e+00 : f32
    %10 = vector.broadcast %cst_7 : f32 to vector<16x128xf32>
    %11 = arith.maximumf %9, %10 : vector<16x128xf32>
    %c0_8 = arith.constant 0 : index
    %c0_9 = arith.constant 0 : index
    %12 = vector.load %arg4[%c0_8, %c0_9] : memref<128x128xf32, #tpu.memory_space<vmem>>, vector<128x128xf32>
    %cst_10 = arith.constant dense<0.000000e+00> : vector<16x128xf32>
    %13 = tpu.matmul %11, %12, %cst_10 {dimension_numbers = #tpu.dot_dimension_numbers<[1], [0], [0], [1], [0, 0, 1, 1], [], []>} : vector<16x128xf32>, vector<128x128xf32>, vector<16x128xf32> -> vector<16x128xf32>
    %c0_11 = arith.constant 0 : index
    %c0_12 = arith.constant 0 : index
    %14 = vector.load %arg5[%c0_11, %c0_12] : memref<1x128xf32, #tpu.memory_space<vmem>>, vector<1x128xf32>
    %15 = vector.broadcast %14 : vector<1x128xf32> to vector<16x128xf32>
    %16 = arith.addf %13, %15 : vector<16x128xf32>
    %cst_13 = arith.constant 0.000000e+00 : f32
    %17 = vector.broadcast %cst_13 : f32 to vector<16x128xf32>
    %18 = arith.maximumf %16, %17 : vector<16x128xf32>
    %c0_14 = arith.constant 0 : index
    %c0_15 = arith.constant 0 : index
    %19 = vector.load %arg6[%c0_14, %c0_15] : memref<128x8xf32, #tpu.memory_space<vmem>>, vector<128x8xf32>
    %cst_16 = arith.constant dense<0.000000e+00> : vector<16x8xf32>
    %20 = tpu.matmul %18, %19, %cst_16 {dimension_numbers = #tpu.dot_dimension_numbers<[1], [0], [0], [1], [0, 0, 1, 1], [], []>} : vector<16x128xf32>, vector<128x8xf32>, vector<16x8xf32> -> vector<16x8xf32>
    %c0_17 = arith.constant 0 : index
    %c0_18 = arith.constant 0 : index
    %21 = vector.load %arg7[%c0_17, %c0_18] : memref<1x8xf32, #tpu.memory_space<vmem>>, vector<1x8xf32>
    %22 = vector.broadcast %21 : vector<1x8xf32> to vector<16x8xf32>
    %23 = arith.addf %20, %22 : vector<16x8xf32>
    %24 = math.tanh %23 : vector<16x8xf32>
    %cst_19 = arith.constant 2.000000e+00 : f32
    %25 = vector.broadcast %cst_19 : f32 to vector<16x8xf32>
    %26 = arith.mulf %24, %25 : vector<16x8xf32>
    %c0_20 = arith.constant 0 : index
    %c0_21 = arith.constant 0 : index
    %27 = vector.load %arg8[%c0_20, %c0_21] : memref<16x8xf32, #tpu.memory_space<vmem>>, vector<16x8xf32>
    tpu.vector_store %arg8[%c0_20, %c0_21], %26 {strides = array<i32>} : memref<16x8xf32, #tpu.memory_space<vmem>>, vector<16x8xf32>,
    return
  }
  func.func @transform_0(%arg0: i32) -> (i32, i32) {
    %c0_i32 = arith.constant 0 : i32
    %c0_i32_0 = arith.constant 0 : i32
    return %arg0, %c0_i32 : i32, i32
  }
  func.func @transform_1(%arg0: i32) -> (i32, i32) {
    %c0_i32 = arith.constant 0 : i32
    %c0_i32_0 = arith.constant 0 : i32
    %c0_i32_1 = arith.constant 0 : i32
    return %c0_i32, %c0_i32_0 : i32, i32
  }
  func.func @transform_2(%arg0: i32) -> (i32, i32) {
    %c0_i32 = arith.constant 0 : i32
    %c0_i32_0 = arith.constant 0 : i32
    %c0_i32_1 = arith.constant 0 : i32
    return %c0_i32, %c0_i32_0 : i32, i32
  }
  func.func @transform_3(%arg0: i32) -> (i32, i32) {
    %c0_i32 = arith.constant 0 : i32
    %c0_i32_0 = arith.constant 0 : i32
    %c0_i32_1 = arith.constant 0 : i32
    return %c0_i32, %c0_i32_0 : i32, i32
  }
  func.func @transform_4(%arg0: i32) -> (i32, i32) {
    %c0_i32 = arith.constant 0 : i32
    %c0_i32_0 = arith.constant 0 : i32
    %c0_i32_1 = arith.constant 0 : i32
    return %c0_i32, %c0_i32_0 : i32, i32
  }
  func.func @transform_5(%arg0: i32) -> (i32, i32) {
    %c0_i32 = arith.constant 0 : i32
    %c0_i32_0 = arith.constant 0 : i32
    %c0_i32_1 = arith.constant 0 : i32
    return %c0_i32, %c0_i32_0 : i32, i32
  }
  func.func @transform_6(%arg0: i32) -> (i32, i32) {
    %c0_i32 = arith.constant 0 : i32
    %c0_i32_0 = arith.constant 0 : i32
    %c0_i32_1 = arith.constant 0 : i32
    return %c0_i32, %c0_i32_0 : i32, i32
  }
  func.func @transform_7(%arg0: i32) -> (i32, i32) {
    %c0_i32 = arith.constant 0 : i32
    %c0_i32_0 = arith.constant 0 : i32
    return %arg0, %c0_i32 : i32, i32
  }
}

</mosaic_0001>

<bundles_post_ra>
// kernel: tpu_custom_call.1
= control target key start
LH: loop header
LB: loop body
LE: loop exit
PB: predicated region body
PF: predicated region fallthrough
CT: control target
= control target key end

     0   :  { %s905_s24 = smov 0   ;;  %s1040_s0 = inlined_call_operand.vmem [shape: f32[32,16], index: 0, kind: input, shape index: {}]   ;;  %s1041_s1 = inlined_call_operand.vmem [shape: f32[16,128], index: 1, kind: input, shape index: {}]   ;;  %s1042_s2 = inlined_call_operand.vmem [shape: f32[1,128], index: 2, kind: input, shape index: {}]   ;;  %s1043_s3 = inlined_call_operand.vmem [shape: f32[128,128], index: 3, kind: input, shape index: {}]   ;;  %s1044_s4 = inlined_call_operand.vmem [shape: f32[1,128], index: 4, kind: input, shape index: {}]   ;;  %s1045_s5 = inlined_call_operand.vmem [shape: f32[128,8], index: 5, kind: input, shape index: {}]   ;;  %s1046_s6 = inlined_call_operand.vmem [shape: f32[1,8], index: 6, kind: input, shape index: {}]   ;;  %s1047_s7 = inlined_call_operand.vmem [shape: f32[32,8], index: 7, kind: output, shape index: {}]  }
   0x1 LB: > { %s642_s25 = sadd.s32 4294967295, %s863_s24   ;;  %p646_p0 = scmp.ge.s32.totalorder %s863_s24, 1  ;;  %s863_s24 = sphi %s905_s24, %s17_s24  }
   0x2   : > { %p238_p1 = scmp.lt.s32.totalorder %s863_s24, 3 }
   0x4   : > { %p239_p2 = pnand %p646_p0, %p238_p1 }
   0x5   : > { %v288_v0 = vld [vmem:[%s1041_s1] sm:$0xff] (!%p239_p2)  ;;  %v289_v1 = vld [vmem:[%s1041_s1 + $0x8] sm:$0xff] (!%p239_p2)  ;;  %s647_s30 = sshll.u32 (!%p239_p2), %s642_s25, 1  ;;  %v383_v5 = vld [vmem:[%s1043_s3 + $0x10] sm:$0xff] (!%p239_p2)  ;;  %vm297_vm0 = vcmask (!%p239_p2), 130048   ;;  %vm583_vm1 = vcmask (!%p239_p2), 64512  }
   0x6   : > { %242 = sbr.rel (%p239_p2) target bundleno = 685 (0x2ad), region = 48  ;;  %v381_v2 = vld [vmem:[%s1043_s3] sm:$0xff] (!%p239_p2)  ;;  %v777_v3 = vpack.c.bf16 (!%p239_p2), %v289_v1, %v288_v0  ;;  %p271_p3 = scmp.lt.s32.totalorder (!%p239_p2), %s647_s30, 3  ;;  %v382_v4 = vld [vmem:[%s1043_s3 + $0x8] sm:$0xff] (!%p239_p2)  ;;  %v384_v6 = vld [vmem:[%s1043_s3 + $0x18] sm:$0xff] (!%p239_p2) }
   0x7   : > { %v781_v7 = vpack.c.bf16 (!%p239_p2), %v382_v4, %v381_v2  ;;  %v785_v8 = vpack.c.bf16 (!%p239_p2), %v384_v6, %v383_v5  ;;  %v385_v9 = vld [vmem:[%s1043_s3 + $0x20] sm:$0xff] (!%p239_p2)  ;;  %v386_v10 = vld [vmem:[%s1043_s3 + $0x28] sm:$0xff] (!%p239_p2)  ;;  %v387_v12 = vld [vmem:[%s1043_s3 + $0x30] sm:$0xff] (!%p239_p2) }
   0x8   : > { %778 = vmatprep.subr.bf16.mxu0 (!%p239_p2), %v777_v3  ;;  %v789_v11 = vpack.c.bf16 (!%p239_p2), %v386_v10, %v385_v9  ;;  %v388_v15 = vld [vmem:[%s1043_s3 + $0x38] sm:$0xff] (!%p239_p2)  ;;  %v389_v19 = vld [vmem:[%s1043_s3 + $0x40] sm:$0xff] (!%p239_p2)  ;;  %v390_v20 = vld [vmem:[%s1043_s3 + $0x48] sm:$0xff] (!%p239_p2) }
   0x9   : > { %780 = vmatpush3.bf16.msra.mxu0 (!%p239_p2), %v777_v3  ;;  %782 = vmatprep.subr.bf16.mxu1 (!%p239_p2), %v781_v7  ;;  %v793_v18 = vpack.c.bf16 (!%p239_p2), %v388_v15, %v387_v12  ;;  %v797_v21 = vpack.c.bf16 (!%p239_p2), %v390_v20, %v389_v19  ;;  %v391_v22 = vld [vmem:[%s1043_s3 + $0x50] sm:$0xff] (!%p239_p2)  ;;  %v392_v23 = vld [vmem:[%s1043_s3 + $0x58] sm:$0xff] (!%p239_p2)  ;;  %v393_v25 = vld [vmem:[%s1043_s3 + $0x60] sm:$0xff] (!%p239_p2) }
   0xa   : > { %784 = vmatpush3.bf16.msra.mxu1 (!%p239_p2), %v781_v7  ;;  %v801_v24 = vpack.c.bf16 (!%p239_p2), %v392_v23, %v391_v22  ;;  %v394_v26 = vld [vmem:[%s1043_s3 + $0x68] sm:$0xff] (!%p239_p2)  ;;  %v395_v28 = vld [vmem:[%s1043_s3 + $0x70] sm:$0xff] (!%p239_p2)  ;;  %v396_v29 = vld [vmem:[%s1043_s3 + $0x78] sm:$0xff] (!%p239_p2) }
   0xb   : > { %786 = vmatprep.subr.bf16.mxu1 (!%p239_p2), %v785_v8  ;;  %v805_v27 = vpack.c.bf16 (!%p239_p2), %v394_v26, %v393_v25  ;;  %v809_v30 = vpack.c.bf16 (!%p239_p2), %v396_v29, %v395_v28  ;;  %v481_v31 = vld [vmem:[%s1045_s5] sm:$0xff] (!%p239_p2)  ;;  %v482_v32 = vld [vmem:[%s1045_s5 + $0x8] sm:$0xff] (!%p239_p2)  ;;  %v483_v33 = vld [vmem:[%s1045_s5 + $0x10] sm:$0xff] (!%p239_p2) }
   0xc   : > { %v813_v34 = vpack.c.bf16 (!%p239_p2), %v482_v32, %v481_v31  ;;  %v484_v35 = vld [vmem:[%s1045_s5 + $0x18] sm:$0xff] (!%p239_p2)  ;;  %v485_v37 = vld [vmem:[%s1045_s5 + $0x20] sm:$0xff] (!%p239_p2)  ;;  %v486_v38 = vld [vmem:[%s1045_s5 + $0x28] sm:$0xff] (!%p239_p2) }
   0xd   : > { %s1049_s30 = smov (!%p271_p3, %s647_s30), 3  ;;  %v817_v36 = vpack.c.bf16 %v484_v35, %v483_v33  ;;  %v821_v39 = vpack.c.bf16 %v486_v38, %v485_v37  ;;  %v487_v40 = vld [vmem:[%s1045_s5 + $0x30] sm:$0xff]  ;;  %v488_v41 = vld [vmem:[%s1045_s5 + $0x38] sm:$0xff]  ;;  %v489_v43 = vld [vmem:[%s1045_s5 + $0x40] sm:$0xff] }
   0xe   : > { %s648_s20 = sshll.u32 %s1049_s30, 3  ;;  %788 = vmatpush3.bf16.msra.mxu1 %v785_v8  ;;  %814 = vmatprep.subr.bf16.mxu0 %v813_v34  ;;  %v825_v42 = vpack.c.bf16 %v488_v41, %v487_v40  ;;  %v490_v44 = vld [vmem:[%s1045_s5 + $0x48] sm:$0xff]  ;;  %v491_v46 = vld [vmem:[%s1045_s5 + $0x50] sm:$0xff]  ;;  %v492_v47 = vld [vmem:[%s1045_s5 + $0x58] sm:$0xff] }
   0xf   : > { %s274_s23 = scalar_lea.vmem %s1040_s0, %s648_s20  ;;  %790 = vmatprep.subr.bf16.mxu1 %v789_v11  ;;  %v829_v45 = vpack.c.bf16 %v490_v44, %v489_v43  ;;  %v833_v48 = vpack.c.bf16 %v492_v47, %v491_v46  ;;  %v493_v49 = vld [vmem:[%s1045_s5 + $0x60] sm:$0xff]  ;;  %v494_v50 = vld [vmem:[%s1045_s5 + $0x68] sm:$0xff]  ;;  %v495_v59 = vld [vmem:[%s1045_s5 + $0x70] sm:$0xff]  ;;  %s280_s25 = scalar_lea.vmem %s1047_s7, %s648_s20 }
  0x10   : > { %v282_v13 = vld [vmem:[%s274_s23] sm:$0xff]  ;;  %v283_v14 = vld [vmem:[%s274_s23 + $0x8] sm:$0xff]  ;;  %v837_v51 = vpack.c.bf16 %v494_v50, %v493_v49  ;;  %v496_v60 = vld [vmem:[%s1045_s5 + $0x78] sm:$0xff] }
  0x11   : > { %v651_v16 = vclamps-f32 %v282_v13, 1.1  ;;  %v652_v17 = vclamps-f32 %v283_v14, 1.1  ;;  %v653_v52 = vld [vmem:[%s1042_s2] ss:$0 sm:$0xff]  ;;  %v841_v61 = vpack.c.bf16 %v496_v60, %v495_v59 }
  0x12   : > { %792 = vmatpush3.bf16.msra.mxu1 %v789_v11  ;;  %v656_v62 = vld [vmem:[%s1044_s4] ss:$0 sm:$0xff] }
  0x13   : > { %704 = vmatprep.mubr.msk.f32.mxu0 %vm297_vm0, %v651_v16  ;;  %794 = vmatprep.subr.bf16.mxu1 %v793_v18  ;;  %v657_v5 = vld [vmem:[%s1046_s6] ss:$0 sm:$0xff] }
  0x14   : > { %705 = vmatmul.mubr.msk.f32.vlgmr.msra.gmra.mrb[0].mxu0 %vm297_vm0, %v652_v17 }
  0x15   : > { %816 = vmatpush3.bf16.msra.mxu0 %v813_v34 }
  0x16   : > { %796 = vmatpush3.bf16.msra.mxu1 %v793_v18  ;;  %818 = vmatprep.subr.bf16.mxu0 %v817_v36 }
  0x17   : > { %798 = vmatprep.subr.bf16.mxu1 %v797_v21 }
  0x19   : > { %820 = vmatpush3.bf16.msra.mxu0 %v817_v36 }
  0x1a   : > { %800 = vmatpush3.bf16.msra.mxu1 %v797_v21  ;;  %822 = vmatprep.subr.bf16.mxu0 %v821_v39 }
  0x1b   : > { %802 = vmatprep.subr.bf16.mxu1 %v801_v24 }
  0x1d   : > { %824 = vmatpush3.bf16.msra.mxu0 %v821_v39 }
  0x1e   : > { %804 = vmatpush3.bf16.msra.mxu1 %v801_v24  ;;  %826 = vmatprep.subr.bf16.mxu0 %v825_v42 }
  0x1f   : > { %806 = vmatprep.subr.bf16.mxu1 %v805_v27 }
  0x21   : > { %828 = vmatpush3.bf16.msra.mxu0 %v825_v42 }
  0x22   : > { %808 = vmatpush3.bf16.msra.mxu1 %v805_v27  ;;  %830 = vmatprep.subr.bf16.mxu0 %v829_v45 }
  0x23   : > { %810 = vmatprep.subr.bf16.mxu1 %v809_v30 }
  0x25   : > { %832 = vmatpush3.bf16.msra.mxu0 %v829_v45 }
  0x26   : > { %812 = vmatpush3.bf16.msra.mxu1 %v809_v30  ;;  %834 = vmatprep.subr.bf16.mxu0 %v833_v48 }
  0x29   : > { %836 = vmatpush3.bf16.msra.mxu0 %v833_v48 }
  0x2a   : > { %838 = vmatprep.subr.bf16.mxu0 %v837_v51 }
  0x2d   : > { %840 = vmatpush3.bf16.msra.mxu0 %v837_v51 }
  0x2e   : > { %842 = vmatprep.subr.bf16.mxu0 %v841_v61 }
  0x31   : > { %844 = vmatpush3.bf16.msra.mxu0 %v841_v61 }
  0xe7   : > { %v706_v53 = vpop.f32.mrb[0].mxu0 }
  0xe8   : > { %v376_v54 = vadd.f32 %v706_v53, %v653_v52  ;;  %v370_v55 = vpop.f32.mrb[1].mxu0 }
  0xe9   : > { %v371_v56 = vadd.f32 %v653_v52, %v370_v55 }
  0xea   : > { %v380_v58 = vmax.f32 %v376_v54, 0.0 }
  0xeb   : > { %v379_v57 = vmax.f32 %v371_v56, 0.0 }
  0xed   : > { %739 = vmatprep.mubr.f32.mxu1 %v379_v57 }
  0xee   : > { %740 = vmatmul.mubr.f32.vlgmr.msra.gmra.mrb[0].mxu1 %v380_v58 }
 0x1c1   : > { %v741_v63 = vpop.f32.mrb[0].mxu1 }
 0x1c2   : > { %v476_v0 = vadd.f32 %v741_v63, %v656_v62  ;;  %v470_v1 = vpop.f32.mrb[1].mxu1 }
 0x1c3   : > { %v471_v2 = vadd.f32 %v656_v62, %v470_v1 }
 0x1c4   : > { %v480_v4 = vmax.f32 %v476_v0, 0.0 }
 0x1c5   : > { %v479_v3 = vmax.f32 %v471_v2, 0.0 }
 0x1c7   : > { %774 = vmatprep.mubr.f32.mxu0 %v479_v3 }
 0x1c8   : > { %775 = vmatmul.mubr.f32.vlgmr.msra.gmra.mrb[2].mxu0 %v480_v4 }
 0x29b   : > { %v776_v6 = vpop.f32.mrb[2].mxu0 }
 0x29c   : > { %v576_v7 = vadd.f32 %v776_v6, %v657_v5  ;;  %v570_v8 = vpop.f32.mrb[3].mxu0 }
 0x29d   : > { %v571_v9 = vadd.f32 %v657_v5, %v570_v8 }
 0x29e   : > { %853 = vtanh.f32 %v576_v7 }
 0x29f   : > { %855 = vtanh.f32 %v571_v9 }
 0x2a8   : > { %v854_v10 = vpop.eup %853 }
 0x2a9   : > { %v856_v11 = vpop.eup %855  ;;  %v582_v13 = vmul.f32 2.0, %v854_v10 }
 0x2aa   : > { %v581_v12 = vmul.f32 2.0, %v856_v11 }
 0x2ab   : > { %585 = vst.msk [vmem:[%s280_s25 + $0x8] sm:$0xff] %vm583_vm1, %v582_v13 }
 0x2ac   : > { %584 = vst.msk [vmem:[%s280_s25] sm:$0xff] %vm583_vm1, %v581_v12 }
 0x2ad PF: > { %s17_s24 = sadd.s32 1, %s863_s24  }
 0x2ae   : > { %p14_p4 = scmp.ge.s32.totalorder %s17_s24, 4  }
 0x2b0   :  { %16 = sbr.rel (!%p14_p4) target bundleno = 1 (0x1), region = 78 }

// kernel: tpu_custom_call.1
= control target key start
LH: loop header
LB: loop body
LE: loop exit
PB: predicated region body
PF: predicated region fallthrough
CT: control target
= control target key end

     0   :  { %s905_s24 = smov 0   ;;  %s1040_s0 = inlined_call_operand.vmem [shape: f32[32,16], index: 0, kind: input, shape index: {}]   ;;  %s1041_s1 = inlined_call_operand.vmem [shape: f32[16,128], index: 1, kind: input, shape index: {}]   ;;  %s1042_s2 = inlined_call_operand.vmem [shape: f32[1,128], index: 2, kind: input, shape index: {}]   ;;  %s1043_s3 = inlined_call_operand.vmem [shape: f32[128,128], index: 3, kind: input, shape index: {}]   ;;  %s1044_s4 = inlined_call_operand.vmem [shape: f32[1,128], index: 4, kind: input, shape index: {}]   ;;  %s1045_s5 = inlined_call_operand.vmem [shape: f32[128,8], index: 5, kind: input, shape index: {}]   ;;  %s1046_s6 = inlined_call_operand.vmem [shape: f32[1,8], index: 6, kind: input, shape index: {}]   ;;  %s1047_s7 = inlined_call_operand.vmem [shape: f32[32,8], index: 7, kind: output, shape index: {}]  }
   0x1 LB: > { %s642_s25 = sadd.s32 4294967295, %s863_s24   ;;  %p646_p0 = scmp.ge.s32.totalorder %s863_s24, 1  ;;  %s863_s24 = sphi %s905_s24, %s17_s24  }
   0x2   : > { %p238_p1 = scmp.lt.s32.totalorder %s863_s24, 3 }
   0x4   : > { %p239_p2 = pnand %p646_p0, %p238_p1 }
   0x5   : > { %v288_v0 = vld [vmem:[%s1041_s1] sm:$0xff] (!%p239_p2)  ;;  %v289_v1 = vld [vmem:[%s1041_s1 + $0x8] sm:$0xff] (!%p239_p2)  ;;  %s647_s30 = sshll.u32 (!%p239_p2), %s642_s25, 1  ;;  %v383_v5 = vld [vmem:[%s1043_s3 + $0x10] sm:$0xff] (!%p239_p2)  ;;  %vm297_vm0 = vcmask (!%p239_p2), 130048   ;;  %vm583_vm1 = vcmask (!%p239_p2), 64512  }
   0x6   : > { %242 = sbr.rel (%p239_p2) target bundleno = 685 (0x2ad), region = 48  ;;  %v381_v2 = vld [vmem:[%s1043_s3] sm:$0xff] (!%p239_p2)  ;;  %v777_v3 = vpack.c.bf16 (!%p239_p2), %v289_v1, %v288_v0  ;;  %p271_p3 = scmp.lt.s32.totalorder (!%p239_p2), %s647_s30, 3  ;;  %v382_v4 = vld [vmem:[%s1043_s3 + $0x8] sm:$0xff] (!%p239_p2)  ;;  %v384_v6 = vld [vmem:[%s1043_s3 + $0x18] sm:$0xff] (!%p239_p2) }
   0x7   : > { %v781_v7 = vpack.c.bf16 (!%p239_p2), %v382_v4, %v381_v2  ;;  %v785_v8 = vpack.c.bf16 (!%p239_p2), %v384_v6, %v383_v5  ;;  %v385_v9 = vld [vmem:[%s1043_s3 + $0x20] sm:$0xff] (!%p239_p2)  ;;  %v386_v10 = vld [vmem:[%s1043_s3 + $0x28] sm:$0xff] (!%p239_p2)  ;;  %v387_v12 = vld [vmem:[%s1043_s3 + $0x30] sm:$0xff] (!%p239_p2) }
   0x8   : > { %778 = vmatprep.subr.bf16.mxu0 (!%p239_p2), %v777_v3  ;;  %v789_v11 = vpack.c.bf16 (!%p239_p2), %v386_v10, %v385_v9  ;;  %v388_v15 = vld [vmem:[%s1043_s3 + $0x38] sm:$0xff] (!%p239_p2)  ;;  %v389_v19 = vld [vmem:[%s1043_s3 + $0x40] sm:$0xff] (!%p239_p2)  ;;  %v390_v20 = vld [vmem:[%s1043_s3 + $0x48] sm:$0xff] (!%p239_p2) }
   0x9   : > { %780 = vmatpush3.bf16.msra.mxu0 (!%p239_p2), %v777_v3  ;;  %782 = vmatprep.subr.bf16.mxu1 (!%p239_p2), %v781_v7  ;;  %v793_v18 = vpack.c.bf16 (!%p239_p2), %v388_v15, %v387_v12  ;;  %v797_v21 = vpack.c.bf16 (!%p239_p2), %v390_v20, %v389_v19  ;;  %v391_v22 = vld [vmem:[%s1043_s3 + $0x50] sm:$0xff] (!%p239_p2)  ;;  %v392_v23 = vld [vmem:[%s1043_s3 + $0x58] sm:$0xff] (!%p239_p2)  ;;  %v393_v25 = vld [vmem:[%s1043_s3 + $0x60] sm:$0xff] (!%p239_p2) }
   0xa   : > { %784 = vmatpush3.bf16.msra.mxu1 (!%p239_p2), %v781_v7  ;;  %v801_v24 = vpack.c.bf16 (!%p239_p2), %v392_v23, %v391_v22  ;;  %v394_v26 = vld [vmem:[%s1043_s3 + $0x68] sm:$0xff] (!%p239_p2)  ;;  %v395_v28 = vld [vmem:[%s1043_s3 + $0x70] sm:$0xff] (!%p239_p2)  ;;  %v396_v29 = vld [vmem:[%s1043_s3 + $0x78] sm:$0xff] (!%p239_p2) }
   0xb   : > { %786 = vmatprep.subr.bf16.mxu1 (!%p239_p2), %v785_v8  ;;  %v805_v27 = vpack.c.bf16 (!%p239_p2), %v394_v26, %v393_v25  ;;  %v809_v30 = vpack.c.bf16 (!%p239_p2), %v396_v29, %v395_v28  ;;  %v481_v31 = vld [vmem:[%s1045_s5] sm:$0xff] (!%p239_p2)  ;;  %v482_v32 = vld [vmem:[%s1045_s5 + $0x8] sm:$0xff] (!%p239_p2)  ;;  %v483_v33 = vld [vmem:[%s1045_s5 + $0x10] sm:$0xff] (!%p239_p2) }
   0xc   : > { %v813_v34 = vpack.c.bf16 (!%p239_p2), %v482_v32, %v481_v31  ;;  %v484_v35 = vld [vmem:[%s1045_s5 + $0x18] sm:$0xff] (!%p239_p2)  ;;  %v485_v37 = vld [vmem:[%s1045_s5 + $0x20] sm:$0xff] (!%p239_p2)  ;;  %v486_v38 = vld [vmem:[%s1045_s5 + $0x28] sm:$0xff] (!%p239_p2) }
   0xd   : > { %s1049_s30 = smov (!%p271_p3, %s647_s30), 3  ;;  %v817_v36 = vpack.c.bf16 %v484_v35, %v483_v33  ;;  %v821_v39 = vpack.c.bf16 %v486_v38, %v485_v37  ;;  %v487_v40 = vld [vmem:[%s1045_s5 + $0x30] sm:$0xff]  ;;  %v488_v41 = vld [vmem:[%s1045_s5 + $0x38] sm:$0xff]  ;;  %v489_v43 = vld [vmem:[%s1045_s5 + $0x40] sm:$0xff] }
   0xe   : > { %s648_s20 = sshll.u32 %s1049_s30, 3  ;;  %788 = vmatpush3.bf16.msra.mxu1 %v785_v8  ;;  %814 = vmatprep.subr.bf16.mxu0 %v813_v34  ;;  %v825_v42 = vpack.c.bf16 %v488_v41, %v487_v40  ;;  %v490_v44 = vld [vmem:[%s1045_s5 + $0x48] sm:$0xff]  ;;  %v491_v46 = vld [vmem:[%s1045_s5 + $0x50] sm:$0xff]  ;;  %v492_v47 = vld [vmem:[%s1045_s5 + $0x58] sm:$0xff] }
   0xf   : > { %s274_s23 = scalar_lea.vmem %s1040_s0, %s648_s20  ;;  %790 = vmatprep.subr.bf16.mxu1 %v789_v11  ;;  %v829_v45 = vpack.c.bf16 %v490_v44, %v489_v43  ;;  %v833_v48 = vpack.c.bf16 %v492_v47, %v491_v46  ;;  %v493_v49 = vld [vmem:[%s1045_s5 + $0x60] sm:$0xff]  ;;  %v494_v50 = vld [vmem:[%s1045_s5 + $0x68] sm:$0xff]  ;;  %v495_v59 = vld [vmem:[%s1045_s5 + $0x70] sm:$0xff]  ;;  %s280_s25 = scalar_lea.vmem %s1047_s7, %s648_s20 }
  0x10   : > { %v282_v13 = vld [vmem:[%s274_s23] sm:$0xff]  ;;  %v283_v14 = vld [vmem:[%s274_s23 + $0x8] sm:$0xff]  ;;  %v837_v51 = vpack.c.bf16 %v494_v50, %v493_v49  ;;  %v496_v60 = vld [vmem:[%s1045_s5 + $0x78] sm:$0xff] }
  0x11   : > { %v651_v16 = vclamps-f32 %v282_v13, 1.1  ;;  %v652_v17 = vclamps-f32 %v283_v14, 1.1  ;;  %v653_v52 = vld [vmem:[%s1042_s2] ss:$0 sm:$0xff]  ;;  %v841_v61 = vpack.c.bf16 %v496_v60, %v495_v59 }
  0x12   : > { %792 = vmatpush3.bf16.msra.mxu1 %v789_v11  ;;  %v656_v62 = vld [vmem:[%s1044_s4] ss:$0 sm:$0xff] }
  0x13   : > { %704 = vmatprep.mubr.msk.f32.mxu0 %vm297_vm0, %v651_v16  ;;  %794 = vmatprep.subr.bf16.mxu1 %v793_v18  ;;  %v657_v5 = vld [vmem:[%s1046_s6] ss:$0 sm:$0xff] }
  0x14   : > { %705 = vmatmul.mubr.msk.f32.vlgmr.msra.gmra.mrb[0].mxu0 %vm297_vm0, %v652_v17 }
  0x15   : > { %816 = vmatpush3.bf16.msra.mxu0 %v813_v34 }
  0x16   : > { %796 = vmatpush3.bf16.msra.mxu1 %v793_v18  ;;  %818 = vmatprep.subr.bf16.mxu0 %v817_v36 }
  0x17   : > { %798 = vmatprep.subr.bf16.mxu1 %v797_v21 }
  0x19   : > { %820 = vmatpush3.bf16.msra.mxu0 %v817_v36 }
  0x1a   : > { %800 = vmatpush3.bf16.msra.mxu1 %v797_v21  ;;  %822 = vmatprep.subr.bf16.mxu0 %v821_v39 }
  0x1b   : > { %802 = vmatprep.subr.bf16.mxu1 %v801_v24 }
  0x1d   : > { %824 = vmatpush3.bf16.msra.mxu0 %v821_v39 }
  0x1e   : > { %804 = vmatpush3.bf16.msra.mxu1 %v801_v24  ;;  %826 = vmatprep.subr.bf16.mxu0 %v825_v42 }
  0x1f   : > { %806 = vmatprep.subr.bf16.mxu1 %v805_v27 }
  0x21   : > { %828 = vmatpush3.bf16.msra.mxu0 %v825_v42 }
  0x22   : > { %808 = vmatpush3.bf16.msra.mxu1 %v805_v27  ;;  %830 = vmatprep.subr.bf16.mxu0 %v829_v45 }
  0x23   : > { %810 = vmatprep.subr.bf16.mxu1 %v809_v30 }
  0x25   : > { %832 = vmatpush3.bf16.msra.mxu0 %v829_v45 }
  0x26   : > { %812 = vmatpush3.bf16.msra.mxu1 %v809_v30  ;;  %834 = vmatprep.subr.bf16.mxu0 %v833_v48 }
  0x29   : > { %836 = vmatpush3.bf16.msra.mxu0 %v833_v48 }
  0x2a   : > { %838 = vmatprep.subr.bf16.mxu0 %v837_v51 }
  0x2d   : > { %840 = vmatpush3.bf16.msra.mxu0 %v837_v51 }
  0x2e   : > { %842 = vmatprep.subr.bf16.mxu0 %v841_v61 }
  0x31   : > { %844 = vmatpush3.bf16.msra.mxu0 %v841_v61 }
  0xe7   : > { %v706_v53 = vpop.f32.mrb[0].mxu0 }
  0xe8   : > { %v376_v54 = vadd.f32 %v706_v53, %v653_v52  ;;  %v370_v55 = vpop.f32.mrb[1].mxu0 }
  0xe9   : > { %v371_v56 = vadd.f32 %v653_v52, %v370_v55 }
  0xea   : > { %v380_v58 = vmax.f32 %v376_v54, 0.0 }
  0xeb   : > { %v379_v57 = vmax.f32 %v371_v56, 0.0 }
  0xed   : > { %739 = vmatprep.mubr.f32.mxu1 %v379_v57 }
  0xee   : > { %740 = vmatmul.mubr.f32.vlgmr.msra.gmra.mrb[0].mxu1 %v380_v58 }
 0x1c1   : > { %v741_v63 = vpop.f32.mrb[0].mxu1 }
 0x1c2   : > { %v476_v0 = vadd.f32 %v741_v63, %v656_v62  ;;  %v470_v1 = vpop.f32.mrb[1].mxu1 }
 0x1c3   : > { %v471_v2 = vadd.f32 %v656_v62, %v470_v1 }
 0x1c4   : > { %v480_v4 = vmax.f32 %v476_v0, 0.0 }
 0x1c5   : > { %v479_v3 = vmax.f32 %v471_v2, 0.0 }
 0x1c7   : > { %774 = vmatprep.mubr.f32.mxu0 %v479_v3 }
 0x1c8   : > { %775 = vmatmul.mubr.f32.vlgmr.msra.gmra.mrb[2].mxu0 %v480_v4 }
 0x29b   : > { %v776_v6 = vpop.f32.mrb[2].mxu0 }
 0x29c   : > { %v576_v7 = vadd.f32 %v776_v6, %v657_v5  ;;  %v570_v8 = vpop.f32.mrb[3].mxu0 }
 0x29d   : > { %v571_v9 = vadd.f32 %v657_v5, %v570_v8 }
 0x29e   : > { %853 = vtanh.f32 %v576_v7 }
 0x29f   : > { %855 = vtanh.f32 %v571_v9 }
 0x2a8   : > { %v854_v10 = vpop.eup %853 }
 0x2a9   : > { %v856_v11 = vpop.eup %855  ;;  %v582_v13 = vmul.f32 2.0, %v854_v10 }
 0x2aa   : > { %v581_v12 = vmul.f32 2.0, %v856_v11 }
 0x2ab   : > { %585 = vst.msk [vmem:[%s280_s25 + $0x8] sm:$0xff] %vm583_vm1, %v582_v13 }
 0x2ac   : > { %584 = vst.msk [vmem:[%s280_s25] sm:$0xff] %vm583_vm1, %v581_v12 }
 0x2ad PF: > { %s17_s24 = sadd.s32 1, %s863_s24  }
 0x2ae   : > { %p14_p4 = scmp.ge.s32.totalorder %s17_s24, 4  }
 0x2b0   :  { %16 = sbr.rel (!%p14_p4) target bundleno = 1 (0x1), region = 78 }

</bundles_post_ra>
